<compile_context>
chip_gen: v5e
topology: v5e:2x2
jax: 0.10.0
libtpu: 0.0.40
codegen_flags: <defaults>
</compile_context>

<pallas_src>
import jax
import jax.numpy as jnp
import numpy as np
from jax import lax
from jax.experimental import pallas as pl
from jax.experimental.pallas import tpu as pltpu

# ---------------------------------------------------------------------------
# Config (mirrors the PyTorch module's `config` dict).  Input spatial size is
# chosen so conv2's flattened output matches the hard-coded fc1 in_features:
#   C2 * 14 * 14 = 4 * 196 = 784.
# ---------------------------------------------------------------------------
CONFIG = dict(out_channels_l1=8, out_channels_l2=4,
              kernel_size_l1=3, kernel_size_l2=3, action_space=6)
B, H, W = 2, 16, 16          # input NCHW = (B, 1, 16, 16)
CELL = 16 * 16               # padded 16x16 "cell" grid per image (14x14 valid + ring)
KSZ = 3                      # both convs are 3x3
TAP_OFFS = tuple(i * 16 + j for i in range(KSZ) for j in range(KSZ))  # 0..34
K1PAD = 16                   # conv1 tap count (9) zero-padded to 16

# TODO(synk): self.pool (MaxPool2d(8)) is defined in __init__ but never used in
# forward(), so it is intentionally not implemented.


# ------------------------------- fused kernel -------------------------------
def _vision_q_fused_kernel(taps_ref, w1_ref, b1_ref, mask_ref,
                           w2_ref, b2_ref, f1w_ref, f1b_ref,
                           f2w_ref, f2b_ref, o_ref,
                           y1pad_ref, col_ref, flat_ref):
    bn = o_ref.shape[0]            # batch
    rows = bn * CELL               # B * 256 cells — the lane axis everywhere
    c1 = w1_ref.shape[0]           # conv1 out channels
    c2 = w2_ref.shape[0]           # conv2 out channels

    # ---- conv1 + bias + relu + ring mask: a single lane-dense MXU matmul ---
    # taps_ref[t, m] = input value under 3x3 tap t at padded-grid cell m.
    acc1 = jnp.dot(w1_ref[...], taps_ref[...],
                   preferred_element_type=jnp.float32)          # (C1, rows)
    # mask zeroes the 1-cell ring of each 14x14 image: it is exactly conv2's
    # zero padding and also kills the junk conv1 values computed there.
    y1 = jnp.maximum(acc1 + b1_ref[...], 0.0) * mask_ref[...]

    # Padded y1 buffer: valid cells + a zeroed 128-lane tail so conv2's
    # shifted taps never read uninitialized VMEM (NaN * 0 would poison fc1).
    y1pad_ref[:, rows:] = jnp.zeros((c1, y1pad_ref.shape[1] - rows),
                                    jnp.float32)
    y1pad_ref[:, 0:rows] = y1

    # ---- conv2 + bias + relu: im2col (9 lane-shifted copies) + ONE matmul --
    for t, off in enumerate(TAP_OFFS):
        col_ref[t * c1:(t + 1) * c1, :] = y1pad_ref[:, off:off + rows]
    acc2 = jnp.dot(w2_ref[...], col_ref[...],
                   preferred_element_type=jnp.float32)          # (C2, rows)
    y2 = jnp.maximum(acc2 + b2_ref[...], 0.0)

    # ---- regroup (C2, B*256) -> (B, C2*256): 8 lane-aligned slab copies ----
    # Ring / overflow cells carry junk but always meet zero fc1 weights.
    for b in range(bn):
        for c in range(c2):
            flat_ref[b:b + 1, c * CELL:(c + 1) * CELL] = \
                y2[c:c + 1, b * CELL:(b + 1) * CELL]

    # ---- fc1 + relu + fc2, computed as (batch, units): direct (B, A) out ---
    h1 = jnp.dot(flat_ref[...], f1w_ref[...],
                 preferred_element_type=jnp.float32)            # (B, 64)
    h1 = jnp.maximum(h1 + f1b_ref[...], 0.0)
    qv = jnp.dot(h1, f2w_ref[...],
                 preferred_element_type=jnp.float32)            # (B, A)
    o_ref[...] = (qv + f2b_ref[...]).astype(o_ref.dtype)


# ------------------------- parameter re-layout (once) ------------------------
def prepare_kernel_params(params, cfg):
    """One-time re-layout of the PyTorch-style parameters for the fused kernel."""
    C1, C2 = cfg["out_channels_l1"], cfg["out_channels_l2"]
    k1, k2 = cfg["kernel_size_l1"], cfg["kernel_size_l2"]
    A = cfg["action_space"]
    HID = params["f1w"].shape[0]
    H2 = W2 = 14
    assert params["f1w"].shape[1] == C2 * H2 * W2

    # conv1: (C1, 1, 3, 3) -> (C1, 16); column t = i*3 + j, zero-padded to 16.
    w1k = jnp.pad(params["c1w"].reshape(C1, k1 * k1),
                  ((0, 0), (0, K1PAD - k1 * k1)))
    # conv2: (C2, C1, 3, 3) -> (C2, 9*C1); column = (i*3+j)*C1 + c_in,
    # matching the kernel's im2col row order.
    w2k = jnp.transpose(params["c2w"], (0, 2, 3, 1)).reshape(C2, k2 * k2 * C1)
    # fc1: (64, C2*14*14) indexed (c, h, w) -> (C2*256, 64) indexed
    # (c, 16x16 cell) with ZERO weight on the padded rows/cols 14,15 —
    # this is the invariant that makes the junk cells of y2 harmless.
    f1 = params["f1w"].reshape(HID, C2, H2, W2)
    f1 = jnp.pad(f1, ((0, 0), (0, 0), (0, 16 - H2), (0, 16 - W2)))
    f1wT = f1.reshape(HID, C2 * CELL).T                          # (C2*256, 64)

    f32 = jnp.float32
    return dict(
        w1k=w1k.astype(f32),
        b1=params["c1b"].reshape(C1, 1).astype(f32),
        w2k=w2k.astype(f32),
        b2=params["c2b"].reshape(C2, 1).astype(f32),
        f1wT=f1wT.astype(f32),
        f1b=params["f1b"].reshape(1, HID).astype(f32),
        f2wT=params["f2w"].T.astype(f32),                        # (64, A)
        f2b=params["f2b"].reshape(1, A).astype(f32),
    )


# --------------------------------- forward ----------------------------------
def vision_q_forward(state, kparams):
    """state: (B, 1, 16, 16) float32 NCHW, exactly like the PyTorch module."""
    Bn = state.shape[0]
    rows = Bn * CELL
    pad_cells = rows + 128          # lane-padded y1 buffer (>= rows + 34)

    # Host-side glue: build the (16, rows) shifted-tap matrix so conv1 is a
    # single lane-dense matmul inside the kernel (review option (b)).
    x_flat = state.reshape(rows)
    x_pad = jnp.pad(x_flat, (17, 17))
    taps = jnp.stack([x_pad[o:o + rows] for o in TAP_OFFS])      # (9, rows)
    taps = jnp.pad(taps, ((0, K1PAD - len(TAP_OFFS)), (0, 0)))   # (16, rows)

    # Constant ring-validity mask (1 on the 14x14 interior, 0 on the ring).
    r = np.arange(CELL) // 16
    s = np.arange(CELL) % 16
    cell_ok = ((r >= 1) & (r <= 14) & (s >= 1) & (s <= 14)).astype(np.float32)
    mask = jnp.asarray(np.tile(cell_ok, Bn).reshape(1, rows))

    C1 = kparams["w1k"].shape[0]
    C2 = kparams["w2k"].shape[0]
    A = kparams["f2wT"].shape[1]

    full = lambda a: pl.BlockSpec(a.shape, lambda i: (0, 0))
    args = (taps, kparams["w1k"], kparams["b1"], mask,
            kparams["w2k"], kparams["b2"],
            kparams["f1wT"], kparams["f1b"],
            kparams["f2wT"], kparams["f2b"])
    return pl.pallas_call(
        _vision_q_fused_kernel,
        out_shape=jax.ShapeDtypeStruct((Bn, A), jnp.float32),
        grid=(1,),
        in_specs=[full(a) for a in args],
        out_specs=pl.BlockSpec((Bn, A), lambda i: (0, 0)),
        # ~0.3 MiB of full blocks + ~0.2 MiB scratch: far below the scoped
        # VMEM limit on every generation, so one full-block grid step.
        # (At B=2 there is no point sharding the step across v7x's 2 TCs;
        #  add a "parallel" batch grid axis only if B grows to >= ~8.)
        scratch_shapes=[
            pltpu.VMEM((C1, pad_cells), jnp.float32),               # padded y1
            pltpu.VMEM((len(TAP_OFFS) * C1, rows), jnp.float32),    # conv2 im2col
            pltpu.VMEM((Bn, C2 * CELL), jnp.float32),               # fc1 input
        ],
    )(*args)


# --------------------------- pure-JAX reference -----------------------------
def vision_q_reference(state, params):
    dn = ("NCHW", "OIHW", "NCHW")
    x = lax.conv_general_dilated(state, params["c1w"], (1, 1), "VALID",
                                 dimension_numbers=dn)
    x = jnp.maximum(x + params["c1b"][None, :, None, None], 0.0)
    x = lax.conv_general_dilated(x, params["c2w"], (1, 1), [(1, 1), (1, 1)],
                                 dimension_numbers=dn)
    x = jnp.maximum(x + params["c2b"][None, :, None, None], 0.0)
    x = x.reshape(x.shape[0], -1)
    x = jnp.maximum(x @ params["f1w"].T + params["f1b"], 0.0)
    return x @ params["f2w"].T + params["f2b"]


# ------------------------------ param init ----------------------------------
def init_params(key, cfg):
    C1, C2 = cfg["out_channels_l1"], cfg["out_channels_l2"]
    k1, k2 = cfg["kernel_size_l1"], cfg["kernel_size_l2"]
    A = cfg["action_space"]

    def u(k, shape, fan_in):
        b = 1.0 / np.sqrt(fan_in)
        return jax.random.uniform(k, shape, jnp.float32, -b, b)

    ks = jax.random.split(key, 8)
    return dict(
        c1w=u(ks[0], (C1, 1, k1, k1), 1 * k1 * k1),
        c1b=u(ks[1], (C1,), 1 * k1 * k1),
        c2w=u(ks[2], (C2, C1, k2, k2), C1 * k2 * k2),
        c2b=u(ks[3], (C2,), C1 * k2 * k2),
        f1w=u(ks[4], (64, 784), 784),
        f1b=u(ks[5], (64,), 784),
        f2w=u(ks[6], (A, 64), 64),
        f2b=u(ks[7], (A,), 64),
    )


if __name__ == "__main__":
    key = jax.random.PRNGKey(0)
    pkey, xkey = jax.random.split(key)
    params = init_params(pkey, CONFIG)
    kparams = prepare_kernel_params(params, CONFIG)   # one-time weight re-layout
    x = jax.random.normal(xkey, (B, 1, H, W), jnp.float32)

    fwd = jax.jit(vision_q_forward)
    out = jax.block_until_ready(fwd(x, kparams))
    ref = jax.block_until_ready(vision_q_reference(x, params))

    assert out.shape == (B, CONFIG["action_space"])
    np.testing.assert_allclose(np.asarray(out), np.asarray(ref),
                               rtol=1e-4, atol=1e-4)
    print("KERNEL_OK")
</pallas_src>

<mosaic_0001>
module attributes {stable_mosaic.version = 11 : i64} {
  func.func @_vision_q_fused_kernel(%arg0: i32, %arg1: memref<16x512xf32, #tpu.memory_space<vmem>>, %arg2: memref<8x16xf32, #tpu.memory_space<vmem>>, %arg3: memref<8x1xf32, #tpu.memory_space<vmem>>, %arg4: memref<1x512xf32, #tpu.memory_space<vmem>>, %arg5: memref<4x72xf32, #tpu.memory_space<vmem>>, %arg6: memref<4x1xf32, #tpu.memory_space<vmem>>, %arg7: memref<1024x64xf32, #tpu.memory_space<vmem>>, %arg8: memref<1x64xf32, #tpu.memory_space<vmem>>, %arg9: memref<64x6xf32, #tpu.memory_space<vmem>>, %arg10: memref<1x6xf32, #tpu.memory_space<vmem>>, %arg11: memref<2x6xf32, #tpu.memory_space<vmem>>, %arg12: memref<8x640xf32, #tpu.memory_space<vmem>>, %arg13: memref<72x512xf32, #tpu.memory_space<vmem>>, %arg14: memref<2x1024xf32, #tpu.memory_space<vmem>>) attributes {dimension_semantics = [#tpu.dimension_semantics<arbitrary>], iteration_bounds = array<i64: 1>, scalar_prefetch = 0 : i64, scratch_operands = 3 : i64, tpu.core_type = #tpu.core_type<tc>, window_params = [{pipeline_mode = #tpu.pipeline_mode<synchronous>, transform_indices = @transform_0, window_bounds = array<i64: 16, 512>}, {pipeline_mode = #tpu.pipeline_mode<synchronous>, transform_indices = @transform_1, window_bounds = array<i64: 8, 16>}, {pipeline_mode = #tpu.pipeline_mode<synchronous>, transform_indices = @transform_2, window_bounds = array<i64: 8, 1>}, {pipeline_mode = #tpu.pipeline_mode<synchronous>, transform_indices = @transform_3, window_bounds = array<i64: 1, 512>}, {pipeline_mode = #tpu.pipeline_mode<synchronous>, transform_indices = @transform_4, window_bounds = array<i64: 4, 72>}, {pipeline_mode = #tpu.pipeline_mode<synchronous>, transform_indices = @transform_5, window_bounds = array<i64: 4, 1>}, {pipeline_mode = #tpu.pipeline_mode<synchronous>, transform_indices = @transform_6, window_bounds = array<i64: 1024, 64>}, {pipeline_mode = #tpu.pipeline_mode<synchronous>, transform_indices = @transform_7, window_bounds = array<i64: 1, 64>}, {pipeline_mode = #tpu.pipeline_mode<synchronous>, transform_indices = @transform_8, window_bounds = array<i64: 64, 6>}, {pipeline_mode = #tpu.pipeline_mode<synchronous>, transform_indices = @transform_9, window_bounds = array<i64: 1, 6>}, {pipeline_mode = #tpu.pipeline_mode<synchronous>, transform_indices = @transform_10, window_bounds = array<i64: 2, 6>}]} {
    %c0 = arith.constant 0 : index
    %c0_0 = arith.constant 0 : index
    %0 = vector.load %arg2[%c0, %c0_0] : memref<8x16xf32, #tpu.memory_space<vmem>>, vector<8x16xf32>
    %c0_1 = arith.constant 0 : index
    %c0_2 = arith.constant 0 : index
    %1 = vector.load %arg1[%c0_1, %c0_2] : memref<16x512xf32, #tpu.memory_space<vmem>>, vector<16x512xf32>
    %cst = arith.constant dense<0.000000e+00> : vector<8x512xf32>
    %2 = tpu.matmul %0, %1, %cst {dimension_numbers = #tpu.dot_dimension_numbers<[1], [0], [0], [1], [0, 0, 1, 1], [], []>} : vector<8x16xf32>, vector<16x512xf32>, vector<8x512xf32> -> vector<8x512xf32>
    %c0_3 = arith.constant 0 : index
    %c0_4 = arith.constant 0 : index
    %3 = vector.load %arg3[%c0_3, %c0_4] : memref<8x1xf32, #tpu.memory_space<vmem>>, vector<8x1xf32>
    %4 = vector.broadcast %3 : vector<8x1xf32> to vector<8x512xf32>
    %5 = arith.addf %2, %4 : vector<8x512xf32>
    %cst_5 = arith.constant 0.000000e+00 : f32
    %6 = vector.broadcast %cst_5 : f32 to vector<8x512xf32>
    %7 = arith.maximumf %5, %6 : vector<8x512xf32>
    %c0_6 = arith.constant 0 : index
    %c0_7 = arith.constant 0 : index
    %8 = vector.load %arg4[%c0_6, %c0_7] : memref<1x512xf32, #tpu.memory_space<vmem>>, vector<1x512xf32>
    %9 = vector.broadcast %8 : vector<1x512xf32> to vector<8x512xf32>
    %10 = arith.mulf %7, %9 : vector<8x512xf32>
    %cst_8 = arith.constant 0.000000e+00 : f32
    %11 = vector.broadcast %cst_8 : f32 to vector<8x128xf32>
    %c0_9 = arith.constant 0 : index
    %c512 = arith.constant 512 : index
    %12 = vector.load %arg12[%c0_9, %c512] : memref<8x640xf32, #tpu.memory_space<vmem>>, vector<8x128xf32>
    tpu.vector_store %arg12[%c0_9, %c512], %11 {strides = array<i32>} : memref<8x640xf32, #tpu.memory_space<vmem>>, vector<8x128xf32>,
    %c0_10 = arith.constant 0 : index
    %c0_11 = arith.constant 0 : index
    %13 = vector.load %arg12[%c0_10, %c0_11] : memref<8x640xf32, #tpu.memory_space<vmem>>, vector<8x512xf32>
    tpu.vector_store %arg12[%c0_10, %c0_11], %10 {strides = array<i32>} : memref<8x640xf32, #tpu.memory_space<vmem>>, vector<8x512xf32>,
    %c0_12 = arith.constant 0 : index
    %c0_13 = arith.constant 0 : index
    %14 = vector.load %arg12[%c0_12, %c0_13] : memref<8x640xf32, #tpu.memory_space<vmem>>, vector<8x512xf32>
    %c0_14 = arith.constant 0 : index
    %c0_15 = arith.constant 0 : index
    %15 = vector.load %arg13[%c0_14, %c0_15] : memref<72x512xf32, #tpu.memory_space<vmem>>, vector<8x512xf32>
    tpu.vector_store %arg13[%c0_14, %c0_15], %14 {strides = array<i32>} : memref<72x512xf32, #tpu.memory_space<vmem>>, vector<8x512xf32>,
    %c0_16 = arith.constant 0 : index
    %c1 = arith.constant 1 : index
    %16 = vector.load %arg12[%c0_16, %c1] : memref<8x640xf32, #tpu.memory_space<vmem>>, vector<8x512xf32>
    %c8 = arith.constant 8 : index
    %c0_17 = arith.constant 0 : index
    %17 = vector.load %arg13[%c8, %c0_17] : memref<72x512xf32, #tpu.memory_space<vmem>>, vector<8x512xf32>
    tpu.vector_store %arg13[%c8, %c0_17], %16 {strides = array<i32>} : memref<72x512xf32, #tpu.memory_space<vmem>>, vector<8x512xf32>,
    %c0_18 = arith.constant 0 : index
    %c2 = arith.constant 2 : index
    %18 = vector.load %arg12[%c0_18, %c2] : memref<8x640xf32, #tpu.memory_space<vmem>>, vector<8x512xf32>
    %c16 = arith.constant 16 : index
    %c0_19 = arith.constant 0 : index
    %19 = vector.load %arg13[%c16, %c0_19] : memref<72x512xf32, #tpu.memory_space<vmem>>, vector<8x512xf32>
    tpu.vector_store %arg13[%c16, %c0_19], %18 {strides = array<i32>} : memref<72x512xf32, #tpu.memory_space<vmem>>, vector<8x512xf32>,
    %c0_20 = arith.constant 0 : index
    %c16_21 = arith.constant 16 : index
    %20 = vector.load %arg12[%c0_20, %c16_21] : memref<8x640xf32, #tpu.memory_space<vmem>>, vector<8x512xf32>
    %c24 = arith.constant 24 : index
    %c0_22 = arith.constant 0 : index
    %21 = vector.load %arg13[%c24, %c0_22] : memref<72x512xf32, #tpu.memory_space<vmem>>, vector<8x512xf32>
    tpu.vector_store %arg13[%c24, %c0_22], %20 {strides = array<i32>} : memref<72x512xf32, #tpu.memory_space<vmem>>, vector<8x512xf32>,
    %c0_23 = arith.constant 0 : index
    %c17 = arith.constant 17 : index
    %22 = vector.load %arg12[%c0_23, %c17] : memref<8x640xf32, #tpu.memory_space<vmem>>, vector<8x512xf32>
    %c32 = arith.constant 32 : index
    %c0_24 = arith.constant 0 : index
    %23 = vector.load %arg13[%c32, %c0_24] : memref<72x512xf32, #tpu.memory_space<vmem>>, vector<8x512xf32>
    tpu.vector_store %arg13[%c32, %c0_24], %22 {strides = array<i32>} : memref<72x512xf32, #tpu.memory_space<vmem>>, vector<8x512xf32>,
    %c0_25 = arith.constant 0 : index
    %c18 = arith.constant 18 : index
    %24 = vector.load %arg12[%c0_25, %c18] : memref<8x640xf32, #tpu.memory_space<vmem>>, vector<8x512xf32>
    %c40 = arith.constant 40 : index
    %c0_26 = arith.constant 0 : index
    %25 = vector.load %arg13[%c40, %c0_26] : memref<72x512xf32, #tpu.memory_space<vmem>>, vector<8x512xf32>
    tpu.vector_store %arg13[%c40, %c0_26], %24 {strides = array<i32>} : memref<72x512xf32, #tpu.memory_space<vmem>>, vector<8x512xf32>,
    %c0_27 = arith.constant 0 : index
    %c32_28 = arith.constant 32 : index
    %26 = vector.load %arg12[%c0_27, %c32_28] : memref<8x640xf32, #tpu.memory_space<vmem>>, vector<8x512xf32>
    %c48 = arith.constant 48 : index
    %c0_29 = arith.constant 0 : index
    %27 = vector.load %arg13[%c48, %c0_29] : memref<72x512xf32, #tpu.memory_space<vmem>>, vector<8x512xf32>
    tpu.vector_store %arg13[%c48, %c0_29], %26 {strides = array<i32>} : memref<72x512xf32, #tpu.memory_space<vmem>>, vector<8x512xf32>,
    %c0_30 = arith.constant 0 : index
    %c33 = arith.constant 33 : index
    %28 = vector.load %arg12[%c0_30, %c33] : memref<8x640xf32, #tpu.memory_space<vmem>>, vector<8x512xf32>
    %c56 = arith.constant 56 : index
    %c0_31 = arith.constant 0 : index
    %29 = vector.load %arg13[%c56, %c0_31] : memref<72x512xf32, #tpu.memory_space<vmem>>, vector<8x512xf32>
    tpu.vector_store %arg13[%c56, %c0_31], %28 {strides = array<i32>} : memref<72x512xf32, #tpu.memory_space<vmem>>, vector<8x512xf32>,
    %c0_32 = arith.constant 0 : index
    %c34 = arith.constant 34 : index
    %30 = vector.load %arg12[%c0_32, %c34] : memref<8x640xf32, #tpu.memory_space<vmem>>, vector<8x512xf32>
    %c64 = arith.constant 64 : index
    %c0_33 = arith.constant 0 : index
    %31 = vector.load %arg13[%c64, %c0_33] : memref<72x512xf32, #tpu.memory_space<vmem>>, vector<8x512xf32>
    tpu.vector_store %arg13[%c64, %c0_33], %30 {strides = array<i32>} : memref<72x512xf32, #tpu.memory_space<vmem>>, vector<8x512xf32>,
    %c0_34 = arith.constant 0 : index
    %c0_35 = arith.constant 0 : index
    %32 = vector.load %arg5[%c0_34, %c0_35] : memref<4x72xf32, #tpu.memory_space<vmem>>, vector<4x72xf32>
    %c0_36 = arith.constant 0 : index
    %c0_37 = arith.constant 0 : index
    %33 = vector.load %arg13[%c0_36, %c0_37] : memref<72x512xf32, #tpu.memory_space<vmem>>, vector<72x512xf32>
    %cst_38 = arith.constant dense<0.000000e+00> : vector<4x512xf32>
    %34 = tpu.matmul %32, %33, %cst_38 {dimension_numbers = #tpu.dot_dimension_numbers<[1], [0], [0], [1], [0, 0, 1, 1], [], []>} : vector<4x72xf32>, vector<72x512xf32>, vector<4x512xf32> -> vector<4x512xf32>
    %c0_39 = arith.constant 0 : index
    %c0_40 = arith.constant 0 : index
    %35 = vector.load %arg6[%c0_39, %c0_40] : memref<4x1xf32, #tpu.memory_space<vmem>>, vector<4x1xf32>
    %36 = vector.broadcast %35 : vector<4x1xf32> to vector<4x512xf32>
    %37 = arith.addf %34, %36 : vector<4x512xf32>
    %cst_41 = arith.constant 0.000000e+00 : f32
    %38 = vector.broadcast %cst_41 : f32 to vector<4x512xf32>
    %39 = arith.maximumf %37, %38 : vector<4x512xf32>
    %40 = vector.extract_strided_slice %39 {offsets = [0, 0], sizes = [1, 256], strides = [1, 1]} : vector<4x512xf32> to vector<1x256xf32>
    %c0_42 = arith.constant 0 : index
    %c0_43 = arith.constant 0 : index
    %41 = vector.load %arg14[%c0_42, %c0_43] : memref<2x1024xf32, #tpu.memory_space<vmem>>, vector<1x256xf32>
    tpu.vector_store %arg14[%c0_42, %c0_43], %40 {strides = array<i32>} : memref<2x1024xf32, #tpu.memory_space<vmem>>, vector<1x256xf32>,
    %42 = vector.extract_strided_slice %39 {offsets = [1, 0], sizes = [1, 256], strides = [1, 1]} : vector<4x512xf32> to vector<1x256xf32>
    %c0_44 = arith.constant 0 : index
    %c256 = arith.constant 256 : index
    %43 = vector.load %arg14[%c0_44, %c256] : memref<2x1024xf32, #tpu.memory_space<vmem>>, vector<1x256xf32>
    tpu.vector_store %arg14[%c0_44, %c256], %42 {strides = array<i32>} : memref<2x1024xf32, #tpu.memory_space<vmem>>, vector<1x256xf32>,
    %44 = vector.extract_strided_slice %39 {offsets = [2, 0], sizes = [1, 256], strides = [1, 1]} : vector<4x512xf32> to vector<1x256xf32>
    %c0_45 = arith.constant 0 : index
    %c512_46 = arith.constant 512 : index
    %45 = vector.load %arg14[%c0_45, %c512_46] : memref<2x1024xf32, #tpu.memory_space<vmem>>, vector<1x256xf32>
    tpu.vector_store %arg14[%c0_45, %c512_46], %44 {strides = array<i32>} : memref<2x1024xf32, #tpu.memory_space<vmem>>, vector<1x256xf32>,
    %46 = vector.extract_strided_slice %39 {offsets = [3, 0], sizes = [1, 256], strides = [1, 1]} : vector<4x512xf32> to vector<1x256xf32>
    %c0_47 = arith.constant 0 : index
    %c768 = arith.constant 768 : index
    %47 = vector.load %arg14[%c0_47, %c768] : memref<2x1024xf32, #tpu.memory_space<vmem>>, vector<1x256xf32>
    tpu.vector_store %arg14[%c0_47, %c768], %46 {strides = array<i32>} : memref<2x1024xf32, #tpu.memory_space<vmem>>, vector<1x256xf32>,
    %48 = vector.extract_strided_slice %39 {offsets = [0, 256], sizes = [1, 256], strides = [1, 1]} : vector<4x512xf32> to vector<1x256xf32>
    %c1_48 = arith.constant 1 : index
    %c0_49 = arith.constant 0 : index
    %49 = vector.load %arg14[%c1_48, %c0_49] : memref<2x1024xf32, #tpu.memory_space<vmem>>, vector<1x256xf32>
    tpu.vector_store %arg14[%c1_48, %c0_49], %48 {strides = array<i32>} : memref<2x1024xf32, #tpu.memory_space<vmem>>, vector<1x256xf32>,
    %50 = vector.extract_strided_slice %39 {offsets = [1, 256], sizes = [1, 256], strides = [1, 1]} : vector<4x512xf32> to vector<1x256xf32>
    %c1_50 = arith.constant 1 : index
    %c256_51 = arith.constant 256 : index
    %51 = vector.load %arg14[%c1_50, %c256_51] : memref<2x1024xf32, #tpu.memory_space<vmem>>, vector<1x256xf32>
    tpu.vector_store %arg14[%c1_50, %c256_51], %50 {strides = array<i32>} : memref<2x1024xf32, #tpu.memory_space<vmem>>, vector<1x256xf32>,
    %52 = vector.extract_strided_slice %39 {offsets = [2, 256], sizes = [1, 256], strides = [1, 1]} : vector<4x512xf32> to vector<1x256xf32>
    %c1_52 = arith.constant 1 : index
    %c512_53 = arith.constant 512 : index
    %53 = vector.load %arg14[%c1_52, %c512_53] : memref<2x1024xf32, #tpu.memory_space<vmem>>, vector<1x256xf32>
    tpu.vector_store %arg14[%c1_52, %c512_53], %52 {strides = array<i32>} : memref<2x1024xf32, #tpu.memory_space<vmem>>, vector<1x256xf32>,
    %54 = vector.extract_strided_slice %39 {offsets = [3, 256], sizes = [1, 256], strides = [1, 1]} : vector<4x512xf32> to vector<1x256xf32>
    %c1_54 = arith.constant 1 : index
    %c768_55 = arith.constant 768 : index
    %55 = vector.load %arg14[%c1_54, %c768_55] : memref<2x1024xf32, #tpu.memory_space<vmem>>, vector<1x256xf32>
    tpu.vector_store %arg14[%c1_54, %c768_55], %54 {strides = array<i32>} : memref<2x1024xf32, #tpu.memory_space<vmem>>, vector<1x256xf32>,
    %c0_56 = arith.constant 0 : index
    %c0_57 = arith.constant 0 : index
    %56 = vector.load %arg14[%c0_56, %c0_57] : memref<2x1024xf32, #tpu.memory_space<vmem>>, vector<2x1024xf32>
    %c0_58 = arith.constant 0 : index
    %c0_59 = arith.constant 0 : index
    %57 = vector.load %arg7[%c0_58, %c0_59] : memref<1024x64xf32, #tpu.memory_space<vmem>>, vector<1024x64xf32>
    %cst_60 = arith.constant dense<0.000000e+00> : vector<2x64xf32>
    %58 = tpu.matmul %56, %57, %cst_60 {dimension_numbers = #tpu.dot_dimension_numbers<[1], [0], [0], [1], [0, 0, 1, 1], [], []>} : vector<2x1024xf32>, vector<1024x64xf32>, vector<2x64xf32> -> vector<2x64xf32>
    %c0_61 = arith.constant 0 : index
    %c0_62 = arith.constant 0 : index
    %59 = vector.load %arg8[%c0_61, %c0_62] : memref<1x64xf32, #tpu.memory_space<vmem>>, vector<1x64xf32>
    %60 = vector.broadcast %59 : vector<1x64xf32> to vector<2x64xf32>
    %61 = arith.addf %58, %60 : vector<2x64xf32>
    %cst_63 = arith.constant 0.000000e+00 : f32
    %62 = vector.broadcast %cst_63 : f32 to vector<2x64xf32>
    %63 = arith.maximumf %61, %62 : vector<2x64xf32>
    %c0_64 = arith.constant 0 : index
    %c0_65 = arith.constant 0 : index
    %64 = vector.load %arg9[%c0_64, %c0_65] : memref<64x6xf32, #tpu.memory_space<vmem>>, vector<64x6xf32>
    %cst_66 = arith.constant dense<0.000000e+00> : vector<2x6xf32>
    %65 = tpu.matmul %63, %64, %cst_66 {dimension_numbers = #tpu.dot_dimension_numbers<[1], [0], [0], [1], [0, 0, 1, 1], [], []>} : vector<2x64xf32>, vector<64x6xf32>, vector<2x6xf32> -> vector<2x6xf32>
    %c0_67 = arith.constant 0 : index
    %c0_68 = arith.constant 0 : index
    %66 = vector.load %arg10[%c0_67, %c0_68] : memref<1x6xf32, #tpu.memory_space<vmem>>, vector<1x6xf32>
    %67 = vector.broadcast %66 : vector<1x6xf32> to vector<2x6xf32>
    %68 = arith.addf %65, %67 : vector<2x6xf32>
    %c0_69 = arith.constant 0 : index
    %c0_70 = arith.constant 0 : index
    %69 = vector.load %arg11[%c0_69, %c0_70] : memref<2x6xf32, #tpu.memory_space<vmem>>, vector<2x6xf32>
    tpu.vector_store %arg11[%c0_69, %c0_70], %68 {strides = array<i32>} : memref<2x6xf32, #tpu.memory_space<vmem>>, vector<2x6xf32>,
    return
  }
  func.func @transform_0(%arg0: i32) -> (i32, i32) {
    %c0_i32 = arith.constant 0 : i32
    %c0_i32_0 = arith.constant 0 : i32
    %c0_i32_1 = arith.constant 0 : i32
    return %c0_i32, %c0_i32_0 : i32, i32
  }
  func.func @transform_1(%arg0: i32) -> (i32, i32) {
    %c0_i32 = arith.constant 0 : i32
    %c0_i32_0 = arith.constant 0 : i32
    %c0_i32_1 = arith.constant 0 : i32
    return %c0_i32, %c0_i32_0 : i32, i32
  }
  func.func @transform_2(%arg0: i32) -> (i32, i32) {
    %c0_i32 = arith.constant 0 : i32
    %c0_i32_0 = arith.constant 0 : i32
    %c0_i32_1 = arith.constant 0 : i32
    return %c0_i32, %c0_i32_0 : i32, i32
  }
  func.func @transform_3(%arg0: i32) -> (i32, i32) {
    %c0_i32 = arith.constant 0 : i32
    %c0_i32_0 = arith.constant 0 : i32
    %c0_i32_1 = arith.constant 0 : i32
    return %c0_i32, %c0_i32_0 : i32, i32
  }
  func.func @transform_4(%arg0: i32) -> (i32, i32) {
    %c0_i32 = arith.constant 0 : i32
    %c0_i32_0 = arith.constant 0 : i32
    %c0_i32_1 = arith.constant 0 : i32
    return %c0_i32, %c0_i32_0 : i32, i32
  }
  func.func @transform_5(%arg0: i32) -> (i32, i32) {
    %c0_i32 = arith.constant 0 : i32
    %c0_i32_0 = arith.constant 0 : i32
    %c0_i32_1 = arith.constant 0 : i32
    return %c0_i32, %c0_i32_0 : i32, i32
  }
  func.func @transform_6(%arg0: i32) -> (i32, i32) {
    %c0_i32 = arith.constant 0 : i32
    %c0_i32_0 = arith.constant 0 : i32
    %c0_i32_1 = arith.constant 0 : i32
    return %c0_i32, %c0_i32_0 : i32, i32
  }
  func.func @transform_7(%arg0: i32) -> (i32, i32) {
    %c0_i32 = arith.constant 0 : i32
    %c0_i32_0 = arith.constant 0 : i32
    %c0_i32_1 = arith.constant 0 : i32
    return %c0_i32, %c0_i32_0 : i32, i32
  }
  func.func @transform_8(%arg0: i32) -> (i32, i32) {
    %c0_i32 = arith.constant 0 : i32
    %c0_i32_0 = arith.constant 0 : i32
    %c0_i32_1 = arith.constant 0 : i32
    return %c0_i32, %c0_i32_0 : i32, i32
  }
  func.func @transform_9(%arg0: i32) -> (i32, i32) {
    %c0_i32 = arith.constant 0 : i32
    %c0_i32_0 = arith.constant 0 : i32
    %c0_i32_1 = arith.constant 0 : i32
    return %c0_i32, %c0_i32_0 : i32, i32
  }
  func.func @transform_10(%arg0: i32) -> (i32, i32) {
    %c0_i32 = arith.constant 0 : i32
    %c0_i32_0 = arith.constant 0 : i32
    %c0_i32_1 = arith.constant 0 : i32
    return %c0_i32, %c0_i32_0 : i32, i32
  }
}

</mosaic_0001>

<bundles_post_ra>
// kernel: vision_q_forward.1
= control target key start
LH: loop header
LB: loop body
LE: loop exit
PB: predicated region body
PF: predicated region fallthrough
CT: control target
= control target key end

     0   :  { %vm51_vm0 = vcmask 130048   ;;  %v1121_v8 = vmov 0   ;;  %s1805_s0 = inlined_call_operand.vmem [shape: f32[16,512], index: 0, kind: input, shape index: {}]   ;;  %s1806_s1 = inlined_call_operand.vmem [shape: f32[8,16], index: 1, kind: input, shape index: {}]   ;;  %s1807_s2 = inlined_call_operand.vmem [shape: f32[8,1], index: 2, kind: input, shape index: {}]   ;;  %s1808_s3 = inlined_call_operand.vmem [shape: f32[1,512], index: 3, kind: input, shape index: {}]   ;;  %s1809_s4 = inlined_call_operand.vmem [shape: f32[4,72], index: 4, kind: input, shape index: {}]   ;;  %s1810_s5 = inlined_call_operand.vmem [shape: f32[4,1], index: 5, kind: input, shape index: {}]   ;;  %s1811_s6 = inlined_call_operand.vmem [shape: f32[1024,64], index: 6, kind: input, shape index: {}]   ;;  %s1812_s7 = inlined_call_operand.vmem [shape: f32[1,64], index: 7, kind: input, shape index: {}]   ;;  %s1813_s8 = inlined_call_operand.vmem [shape: f32[64,6], index: 8, kind: input, shape index: {}]   ;;  %s1814_s9 = inlined_call_operand.vmem [shape: f32[1,6], index: 9, kind: input, shape index: {}]   ;;  %s1815_s10 = inlined_call_operand.hbm [shape: f32[2,6], index: 10, kind: output, shape index: {}]  }
   0x1   :  { %v41_v0 = vld [vmem:[%s1805_s0 + $0x20] sm:$0xff]  ;;  %v43_v1 = vld [vmem:[%s1805_s0 + $0x30] sm:$0xff]  ;;  %v44_v2 = vld [vmem:[%s1805_s0 + $0x38] sm:$0xff]  ;;  %1011 = vset.pattern.permute.xlu0 %v1121_v8 }
   0x2   :  { %69 = vmatpush.msra.mxu1 %v41_v0  ;;  %109 = vmatpush.msra.mxu2 %v43_v1  ;;  %v37_v3 = vld [vmem:[%s1805_s0] sm:$0xff]  ;;  %v39_v4 = vld [vmem:[%s1805_s0 + $0x10] sm:$0xff]  ;;  %v40_v5 = vld [vmem:[%s1805_s0 + $0x18] sm:$0xff] }
   0x3   :  { %129 = vmatpush.msra.mxu3 %v44_v2  ;;  %v36_v6 = vld [vmem:[%s1806_s1] sm:$0xff]  ;;  %v42_v7 = vld [vmem:[%s1805_s0 + $0x28] sm:$0xff] }
   0x4   :  { %70 = vmatpush.msra.mxu1 %v37_v3  ;;  %110 = vmatpush.msra.mxu2 %v39_v4  ;;  %v45_v9 = vld [vmem:[%s1807_s2] sm:$0xff] }
   0x5   :  { %130 = vmatpush.msra.mxu3 %v40_v5  ;;  %991 = vmatmul.msk.f32.vlgmr.msra.gmra.mxu1 %vm51_vm0, %v36_v6 }
   0x6   :  { %15 = vsyncpa [#allocation6], 0  ;;  %993 = vmatmul.msk.f32.vlgmr.msra.gmra.mxu2 %vm51_vm0, %v36_v6  ;;  %994 = vmatmul.msk.f32.vlgmr.msra.gmra.mxu3 %vm51_vm0, %v36_v6  ;;  %v38_v10 = vld [vmem:[%s1805_s0 + $0x8] sm:$0xff]  ;;  %v139_v12 = vld [vmem:[%s1808_s3] sm:$0xf]  ;;  %s1122_s0 = smov 96  }
   0x7   :  { %89 = vmatpush.msrb.mxu1 %v42_v7  ;;  %48 = vperm.xlu0 %1011, %v45_v9   ;;  %v143_v17 = vperm.slane %v139_v12, 2  ;;  %v144_v19 = vperm.slane %v139_v12, 3  ;;  %s1123_s3 = smov 95   ;;  %s1124_s13 = smov 94   ;;  %v142_v29 = vperm.slane %v139_v12, 1  ;;  %v141_v30 = vperm.slane %v139_v12, 0 }
   0x8   :  { %1092 = vset.pattern.permute.xlu1 %v1121_v8  ;;  %s1125_s14 = smov 112   ;;  %s1126_s15 = smov 110   ;;  %v1130_v35 = vmov 0.0   ;;  %vm417_vm1 = vcmask 769024   ;;  %vm384_vm2 = vcmask 777216   ;;  %vm351_vm3 = vcmask 785408  }
   0x9   :  { %90 = vmatpush.msrb.mxu1 %v38_v10  ;;  %s1127_s16 = smov 111   ;;  %s1128_s17 = smov 126   ;;  %vm318_vm4 = vcmask 900096   ;;  %v467_v8 = vld [vmem:[%s1810_s5] sm:$0xf]  ;;  %vm285_vm5 = vcmask 908288  }
   0xa   :  { %s1129_s18 = smov 127   ;;  %vm252_vm6 = vcmask 916480   ;;  %vm219_vm7 = vcmask 1031168   ;;  %vm186_vm8 = vcmask 1039360   ;;  %vm473_vm9 = vcmask 588800   ;;  %s1131_s12 = smov [#allocation5]  }
   0xb   :  { %vm564_vm10 = vcmask 1040384   ;;  %vm949_vm12 = vcmask 523264   ;;  %vm973_vm13 = vcmask 41984  }
   0xd   :  { %992 = vmatmul.msk.f32.vlgmr.msrb.gmra.mxu1 %vm51_vm0, %v36_v6 }
  0x79   :  { %v49_v13 = vpop.permute.xlu0 %48 }
  0x82   :  { %v72_v11 = vpop.f32.mrf.mxu1 }
  0x83   :  { %v73_v27 = vadd.f32 %v72_v11, %v49_v13 }
  0x85   :  { %v135_v31 = vmax.f32 %v73_v27, 0.0 }
  0x87   :  { %v1237_v33 = vmul.f32 %v141_v30, %v135_v31 }
  0x89   :  { %v112_v14 = vpop.f32.mrf.mxu2  ;;  %v132_v15 = vpop.f32.mrf.mxu3 }
  0x8a   :  { %v113_v16 = vadd.f32 %v112_v14, %v49_v13  ;;  %v133_v18 = vadd.f32 %v132_v15, %v49_v13  ;;  %v92_v25 = vpop.f32.mrf.mxu1 }
  0x8b   :  { %v93_v26 = vadd.f32 %v92_v25, %v49_v13 }
  0x8c   :  { %v137_v20 = vmax.f32 %v113_v16, 0.0  ;;  %v138_v21 = vmax.f32 %v133_v18, 0.0 }
  0x8d   :  { %v136_v28 = vmax.f32 %v93_v26, 0.0 }
  0x8e   :  { %v1224_v22 = vmul.f32 %v143_v17, %v137_v20  ;;  %v1226_v23 = vmul.f32 %v144_v19, %v138_v21 }
  0x8f   :  { %v1235_v32 = vmul.f32 %v142_v29, %v136_v28 }
  0x90   :  { %v1022_v24 = vpack.i.bf16 %v1226_v23, %v1224_v22  ;;  %v1072_v36 = vpack.i.bf16 0.0, %v1226_v23 }
  0x91   :  { %v1032_v34 = vpack.i.bf16 %v1235_v32, %v1237_v33 }
  0x92   :  { %1023 = vrot.lane.b32.xlu0 %v1022_v24, %s1122_s0  ;;  %1018 = vrot.lane.b32.xlu2 %v1022_v24, %s1123_s3 }
  0x93   :  { %1013 = vrot.lane.b32.xlu1 %v1022_v24, %s1124_s13 }
  0x9a   :  { %246 = vrot.lane.b32.xlu0 %v1224_v22, %s1125_s14  ;;  %1028 = vrot.lane.b32.xlu2 %v1022_v24, %s1126_s15 }
  0x9b   :  { %279 = vrot.lane.b32.xlu1 %v1224_v22, %s1127_s16 }
  0xa2   :  { %213 = vrot.lane.b32.xlu2 %v1224_v22, %s1128_s17  ;;  %1033 = vrot.lane.b32.xlu0 %v1032_v34, %s1124_s13 }
  0xa3   :  { %180 = vrot.lane.b32.xlu1 %v1224_v22, %s1129_s18 }
  0xaa   :  { %1043 = vrot.lane.b32.xlu2 %v1032_v34, %s1122_s0  ;;  %1053 = vrot.lane.b32.xlu0 %v1032_v34, %s1127_s16 }
  0xab   :  { %1038 = vrot.lane.b32.xlu1 %v1032_v34, %s1123_s3 }
  0xb2   :  { %1058 = vrot.lane.b32.xlu2 %v1032_v34, %s1125_s14  ;;  %1068 = vrot.lane.b32.xlu0 %v1032_v34, %s1129_s18 }
  0xb3   :  { %1048 = vrot.lane.b32.xlu1 %v1032_v34, %s1126_s15 }
  0xba   :  { %415 = vrot.lane.b32.xlu2 %v1130_v35, %s1124_s13  ;;  %382 = vrot.lane.b32.xlu0 %v1130_v35, %s1123_s3 }
  0xbb   :  { %1063 = vrot.lane.b32.xlu1 %v1032_v34, %s1128_s17 }
  0xc2   :  { %316 = vrot.lane.b32.xlu2 %v1130_v35, %s1126_s15  ;;  %1073 = vrot.lane.b32.xlu0 %v1072_v36, %s1127_s16 }
  0xc3   :  { %349 = vrot.lane.b32.xlu1 %v1130_v35, %s1122_s0  ;;  %s980_s0 = sshll.u32 %s1131_s12, 4  ;;  %s981_s0 = int_to_ptr.vmem [resolvable:$true] %s980_s0 }
  0xca   :  { %1083 = vrot.lane.b32.xlu2 %v1072_v36, %s1128_s17  ;;  %1088 = vrot.lane.b32.xlu0 %v1072_v36, %s1129_s18 }
  0xcb   :  { %1078 = vrot.lane.b32.xlu1 %v1072_v36, %s1125_s14  ;;  %s982_s14 = sshll.u32 %s1815_s10, 4  ;;  %s983_s14 = int_to_ptr.hbm [resolvable:$true] %s982_s14 }
  0xd3   :  { %470 = vperm.xlu1 %1092, %v467_v8   ;;  %v652_v8 = vld [vmem:[%s1811_s6 + $0xe8] sm:$0xff] }
  0xec   :  { %v1250_v37 = vpop.permute.xlu2 %1018 }
  0xed   :  { %v1021_v43 = vunpack.i.h.bf16 %v1250_v37  ;;  %v1020_v44 = vunpack.i.l.bf16 %v1250_v37 }
  0xef   :  { %v387_v52 = vsel %vm384_vm2, %v1020_v44, %v1021_v43 }
  0xf4   :  { %v1252_v38 = vpop.permute.xlu2 %1028 }
  0xf5   :  { %v1031_v50 = vunpack.i.h.bf16 %v1252_v38  ;;  %v1030_v51 = vunpack.i.l.bf16 %v1252_v38 }
  0xf7   :  { %v321_v57 = vsel %vm318_vm4, %v1030_v51, %v1031_v50 }
  0xfc   :  { %v1254_v39 = vpop.permute.xlu2 %213 }
 0x104   :  { %v1256_v40 = vpop.permute.xlu0 %1023  ;;  %v1044_v41 = vpop.permute.xlu2 %1043 }
 0x105   :  { %v1014_v42 = vpop.permute.xlu1 %1013  ;;  %v1026_v47 = vunpack.i.h.bf16 %v1256_v40  ;;  %v1025_v48 = vunpack.i.l.bf16 %v1256_v40  ;;  %v1046_v4 = vunpack.i.h.bf16 %v1044_v41  ;;  %v1045_v5 = vunpack.i.l.bf16 %v1044_v41 }
 0x106   :  { %v1016_v45 = vunpack.i.h.bf16 %v1014_v42  ;;  %v1015_v46 = vunpack.i.l.bf16 %v1014_v42 }
 0x107   :  { %v354_v54 = vsel %vm351_vm3, %v1025_v48, %v1026_v47  ;;  %v352_v11 = vsel %vm351_vm3, %v1045_v5, %v1046_v4  ;;  %v353_v12 = vsel %vm351_vm3, %v1046_v4, %v1025_v48  ;;  %v653_v4 = vld [vmem:[%s1811_s6 + $0xf0] sm:$0xff] }
 0x108   :  { %v420_v49 = vsel %vm417_vm1, %v1015_v46, %v1016_v45  ;;  %v669_v5 = vld [vmem:[%s1811_s6 + $0x170] sm:$0xff] }
 0x109   :  { %524 = vmatpush.msrb.mxu2 %v420_v49 }
 0x10b   :  { %525 = vmatpush.msrb.mxu2 %v387_v52 }
 0x10c   :  { %v1268_v53 = vpop.permute.xlu0 %246  ;;  %v1059_v55 = vpop.permute.xlu2 %1058 }
 0x10d   :  { %v1273_v56 = vpop.permute.xlu1 %279  ;;  %526 = vmatpush.msrb.mxu2 %v354_v54  ;;  %v1061_v19 = vunpack.i.h.bf16 %v1059_v55  ;;  %v1060_v20 = vunpack.i.l.bf16 %v1059_v55 }
 0x10f   :  { %527 = vmatpush.msrb.mxu2 %v321_v57  ;;  %v253_v28 = vsel %vm252_vm6, %v1060_v20, %v1061_v19  ;;  %v254_v29 = vsel %vm252_vm6, %v1061_v19, %v1268_v53  ;;  %v633_v19 = vld [vmem:[%s1811_s6 + $0x50] sm:$0xff] }
 0x110   :  { %v649_v20 = vld [vmem:[%s1811_s6 + $0xd0] sm:$0xff] }
 0x114   :  { %v416_v58 = vpop.permute.xlu2 %415  ;;  %v1034_v59 = vpop.permute.xlu0 %1033 }
 0x115   :  { %v1278_v60 = vpop.permute.xlu1 %180  ;;  %v1036_v61 = vunpack.i.h.bf16 %v1034_v59  ;;  %v1035_v62 = vunpack.i.l.bf16 %v1034_v59  ;;  %v421_v63 = vsel %vm417_vm1, %v1016_v45, %v416_v58 }
 0x116   :  { %544 = vmatpush.msrb.mxu3 %v421_v63 }
 0x117   :  { %v418_v0 = vsel %vm417_vm1, %v1035_v62, %v1036_v61  ;;  %v419_v1 = vsel %vm417_vm1, %v1036_v61, %v1015_v46 }
 0x118   :  { %484 = vmatpush.msra.mxu0 %v418_v0  ;;  %504 = vmatpush.msra.mxu1 %v419_v1 }
 0x11c   :  { %v1054_v2 = vpop.permute.xlu0 %1053  ;;  %v317_v45 = vpop.permute.xlu2 %316 }
 0x11d   :  { %v1039_v3 = vpop.permute.xlu1 %1038  ;;  %v1056_v15 = vunpack.i.h.bf16 %v1054_v2  ;;  %v1055_v16 = vunpack.i.l.bf16 %v1054_v2 }
 0x11e   :  { %v1041_v6 = vunpack.i.h.bf16 %v1039_v3  ;;  %v1040_v7 = vunpack.i.l.bf16 %v1039_v3 }
 0x11f   :  { %v286_v25 = vsel %vm285_vm5, %v1055_v16, %v1056_v15  ;;  %v287_v26 = vsel %vm285_vm5, %v1056_v15, %v1273_v56  ;;  %v634_v15 = vld [vmem:[%s1811_s6 + $0x58] sm:$0xff] }
 0x120   :  { %v385_v9 = vsel %vm384_vm2, %v1040_v7, %v1041_v6  ;;  %v386_v10 = vsel %vm384_vm2, %v1041_v6, %v1020_v44  ;;  %v685_v6 = vld [vmem:[%s1811_s6 + $0x1f0] sm:$0xff]  ;;  %v636_v7 = vld [vmem:[%s1811_s6 + $0x68] sm:$0xff]  ;;  %v650_v16 = vld [vmem:[%s1811_s6 + $0xd8] sm:$0xff] }
 0x121   :  { %485 = vmatpush.msra.mxu0 %v385_v9  ;;  %505 = vmatpush.msra.mxu1 %v386_v10  ;;  %v668_v9 = vld [vmem:[%s1811_s6 + $0x168] sm:$0xff] }
 0x122   :  { %v684_v10 = vld [vmem:[%s1811_s6 + $0x1e8] sm:$0xff] }
 0x123   :  { %486 = vmatpush.msra.mxu0 %v352_v11  ;;  %506 = vmatpush.msra.mxu1 %v353_v12  ;;  %v635_v11 = vld [vmem:[%s1811_s6 + $0x60] sm:$0xff] }
 0x124   :  { %v1069_v13 = vpop.permute.xlu0 %1068  ;;  %v1084_v57 = vpop.permute.xlu2 %1083  ;;  %v651_v12 = vld [vmem:[%s1811_s6 + $0xe0] sm:$0xff] }
 0x125   :  { %v1049_v14 = vpop.permute.xlu1 %1048  ;;  %v1071_v34 = vunpack.i.h.bf16 %v1069_v13  ;;  %v1070_v35 = vunpack.i.l.bf16 %v1069_v13  ;;  %v1086_v61 = vunpack.i.h.bf16 %v1084_v57  ;;  %v1085_v40 = vunpack.i.l.bf16 %v1084_v57  ;;  %v667_v13 = vld [vmem:[%s1811_s6 + $0x160] sm:$0xff]  ;;  %v944_v57 = vld [vmem:[%s1813_s8 + $0x38] sm:$0xff] }
 0x126   :  { %v1051_v17 = vunpack.i.h.bf16 %v1049_v14  ;;  %v1050_v18 = vunpack.i.l.bf16 %v1049_v14  ;;  %v683_v14 = vld [vmem:[%s1811_s6 + $0x1e0] sm:$0xff] }
 0x127   :  { %v187_v46 = vsel %vm186_vm8, %v1070_v35, %v1071_v34  ;;  %v188_v37 = vsel %vm186_vm8, %v1071_v34, %v1278_v60  ;;  %v223_v1 = vsel %vm219_vm7, %v1085_v40, %v1086_v61  ;;  %v679_v34 = vld [vmem:[%s1811_s6 + $0x1c0] sm:$0xff]  ;;  %v630_v35 = vld [vmem:[%s1811_s6 + $0x38] sm:$0xff]  ;;  %v660_v61 = vld [vmem:[%s1811_s6 + $0x128] sm:$0xff] }
 0x128   :  { %v319_v21 = vsel %vm318_vm4, %v1050_v18, %v1051_v17  ;;  %v320_v24 = vsel %vm318_vm4, %v1051_v17, %v1030_v51  ;;  %v666_v17 = vld [vmem:[%s1811_s6 + $0x158] sm:$0xff] }
 0x129   :  { %487 = vmatpush.msra.mxu0 %v319_v21  ;;  %507 = vmatpush.msra.mxu1 %v320_v24  ;;  %v682_v18 = vld [vmem:[%s1811_s6 + $0x1d8] sm:$0xff]  ;;  %v665_v21 = vld [vmem:[%s1811_s6 + $0x150] sm:$0xff] }
 0x12a   :  { %v681_v24 = vld [vmem:[%s1811_s6 + $0x1d0] sm:$0xff] }
 0x12b   :  { %488 = vmatpush.msra.mxu0 %v286_v25  ;;  %508 = vmatpush.msra.mxu1 %v287_v26  ;;  %v632_v25 = vld [vmem:[%s1811_s6 + $0x48] sm:$0xff] }
 0x12c   :  { %v383_v27 = vpop.permute.xlu0 %382  ;;  %v648_v26 = vld [vmem:[%s1811_s6 + $0xc8] sm:$0xff] }
 0x12d   :  { %v1064_v30 = vpop.permute.xlu1 %1063  ;;  %489 = vmatpush.msra.mxu0 %v253_v28  ;;  %509 = vmatpush.msra.mxu1 %v254_v29  ;;  %v388_v31 = vsel %vm384_vm2, %v1021_v43, %v383_v27  ;;  %v430_v43 = vld [vmem:[%s1809_s4] sm:$0xf]  ;;  %v664_v27 = vld [vmem:[%s1811_s6 + $0x148] sm:$0xff] }
 0x12e   :  { %v1066_v36 = vunpack.i.h.bf16 %v1064_v30  ;;  %v1065_v41 = vunpack.i.l.bf16 %v1064_v30  ;;  %545 = vmatpush.msrb.mxu3 %v388_v31  ;;  %v680_v28 = vld [vmem:[%s1811_s6 + $0x1c8] sm:$0xff]  ;;  %v631_v29 = vld [vmem:[%s1811_s6 + $0x40] sm:$0xff] }
 0x12f   :  { %v647_v30 = vld [vmem:[%s1811_s6 + $0xc0] sm:$0xff] }
 0x130   :  { %v220_v42 = vsel %vm219_vm7, %v1065_v41, %v1066_v36  ;;  %v221_v44 = vsel %vm219_vm7, %v1066_v36, %v1254_v39  ;;  %v663_v31 = vld [vmem:[%s1811_s6 + $0x140] sm:$0xff]  ;;  %v646_v36 = vld [vmem:[%s1811_s6 + $0xb8] sm:$0xff] }
 0x131   :  { %490 = vmatpush.msra.mxu0 %v220_v42  ;;  %510 = vmatpush.msra.mxu1 %v221_v44  ;;  %v662_v41 = vld [vmem:[%s1811_s6 + $0x138] sm:$0xff] }
 0x132   :  { %v678_v42 = vld [vmem:[%s1811_s6 + $0x1b8] sm:$0xff] }
 0x133   :  { %491 = vmatpush.msra.mxu0 %v187_v46  ;;  %511 = vmatpush.msra.mxu1 %v188_v37 }
 0x134   :  { %v1074_v48 = vpop.permute.xlu0 %1073 }
 0x135   :  { %v350_v49 = vpop.permute.xlu1 %349  ;;  %v1075_v51 = vunpack.i.l.bf16 %v1074_v48  ;;  %492 = vmatpush.msra.mxu0 %v1237_v33  ;;  %512 = vmatpush.msra.mxu1 %v1235_v32  ;;  %v1076_v52 = vunpack.i.h.bf16 %v1074_v48  ;;  %v322_v33 = vsel %vm318_vm4, %v1031_v50, %v317_v45  ;;  %v222_v50 = vsel %vm219_vm7, %v1254_v39, %v1085_v40  ;;  %v638_v39 = vld [vmem:[%s1811_s6 + $0x78] sm:$0xff]  ;;  %v676_v40 = vld [vmem:[%s1811_s6 + $0x1a8] sm:$0xff] }
 0x136   :  { %995 = vmatmul.msk.f32.vlgmr.msra.gmra.mxu0 %vm473_vm9, %v430_v43  ;;  %996 = vmatmul.msk.f32.vlgmr.msra.gmra.mxu1 %vm473_vm9, %v430_v43  ;;  %v355_v54 = vsel %vm351_vm3, %v1026_v47, %v350_v49  ;;  %v567_v48 = vlaneseq }
 0x137   :  { %546 = vmatpush.msrb.mxu3 %v355_v54  ;;  %v288_v55 = vsel %vm285_vm5, %v1273_v56, %v1075_v51  ;;  %v289_v32 = vsel %vm285_vm5, %v1075_v51, %v1076_v52  ;;  %776 = vmatpush.msrb.mxu0 %v638_v39  ;;  %v629_v52 = vld [vmem:[%s1811_s6 + $0x30] sm:$0xff] }
 0x138   :  { %528 = vmatpush.msrb.mxu2 %v288_v55  ;;  %v645_v54 = vld [vmem:[%s1811_s6 + $0xb0] sm:$0xff]  ;;  %vm1466_vm11 = vcmp.lt.s32.totalorder %v567_v48, 256 }
 0x139   :  { %547 = vmatpush.msrb.mxu3 %v322_v33  ;;  %v661_v55 = vld [vmem:[%s1811_s6 + $0x130] sm:$0xff] }
 0x13a   :  { %v677_v33 = vld [vmem:[%s1811_s6 + $0x1b0] sm:$0xff] }
 0x13b   :  { %548 = vmatpush.msrb.mxu3 %v289_v32  ;;  %v641_v39 = vld [vmem:[%s1811_s6 + $0x90] sm:$0xff] }
 0x13c   :  { %v1089_v59 = vpop.permute.xlu0 %1088 }
 0x13d   :  { %v1079_v58 = vpop.permute.xlu1 %1078  ;;  %v1091_v63 = vunpack.i.h.bf16 %v1089_v59  ;;  %v1090_v0 = vunpack.i.l.bf16 %v1089_v59  ;;  %v644_v59 = vld [vmem:[%s1811_s6 + $0xa8] sm:$0xff] }
 0x13e   :  { %v1081_v62 = vunpack.i.h.bf16 %v1079_v58  ;;  %v1080_v47 = vunpack.i.l.bf16 %v1079_v58  ;;  %v628_v58 = vld [vmem:[%s1811_s6 + $0x28] sm:$0xff] }
 0x13f   :  { %v189_v2 = vsel %vm186_vm8, %v1278_v60, %v1090_v0  ;;  %v190_v3 = vsel %vm186_vm8, %v1090_v0, %v1091_v63  ;;  %v670_v60 = vld [vmem:[%s1811_s6 + $0x178] sm:$0xff]  ;;  %v643_v63 = vld [vmem:[%s1811_s6 + $0xa0] sm:$0xff] }
 0x140   :  { %v255_v56 = vsel %vm252_vm6, %v1268_v53, %v1080_v47  ;;  %v256_v38 = vsel %vm252_vm6, %v1080_v47, %v1081_v62  ;;  %v654_v53 = vld [vmem:[%s1811_s6 + $0xf8] sm:$0xff]  ;;  %v627_v47 = vld [vmem:[%s1811_s6 + $0x20] sm:$0xff] }
 0x141   :  { %529 = vmatpush.msrb.mxu2 %v255_v56  ;;  %549 = vmatpush.msrb.mxu3 %v256_v38  ;;  %v659_v0 = vld [vmem:[%s1811_s6 + $0x120] sm:$0xff]  ;;  %v626_v38 = vld [vmem:[%s1811_s6 + $0x18] sm:$0xff] }
 0x142   :  { %796 = vmatpush.msrb.mxu1 %v654_v53  ;;  %v675_v56 = vld [vmem:[%s1811_s6 + $0x1a0] sm:$0xff]  ;;  %v657_v53 = vld [vmem:[%s1811_s6 + $0x110] sm:$0xff] }
 0x143   :  { %530 = vmatpush.msrb.mxu2 %v222_v50  ;;  %550 = vmatpush.msrb.mxu3 %v223_v1  ;;  %v642_v50 = vld [vmem:[%s1811_s6 + $0x98] sm:$0xff] }
 0x144   :  { %797 = vmatpush.msrb.mxu1 %v653_v4  ;;  %v658_v1 = vld [vmem:[%s1811_s6 + $0x118] sm:$0xff]  ;;  %v640_v4 = vld [vmem:[%s1811_s6 + $0x88] sm:$0xff] }
 0x145   :  { %531 = vmatpush.msrb.mxu2 %v189_v2  ;;  %551 = vmatpush.msrb.mxu3 %v190_v3  ;;  %v1444_v44 = vpop.permute.xlu1 %470  ;;  %v674_v2 = vld [vmem:[%s1811_s6 + $0x198] sm:$0xff]  ;;  %v625_v3 = vld [vmem:[%s1811_s6 + $0x10] sm:$0xff] }
 0x146   :  { %798 = vmatpush.msrb.mxu1 %v652_v8  ;;  %v639_v8 = vld [vmem:[%s1811_s6 + $0x80] sm:$0xff] }
 0x147   :  { %532 = vmatpush.msrb.mxu2 %v1224_v22  ;;  %552 = vmatpush.msrb.mxu3 %v1226_v23  ;;  %v686_v22 = vld [vmem:[%s1811_s6 + $0x1f8] sm:$0xff]  ;;  %v637_v23 = vld [vmem:[%s1811_s6 + $0x70] sm:$0xff] }
 0x148   :  { %997 = vmatmul.msk.f32.vlgmr.msrb.gmra.mxu2 %vm473_vm9, %v430_v43  ;;  %998 = vmatmul.msk.f32.vlgmr.msrb.gmra.mxu3 %vm473_vm9, %v430_v43 }
 0x149   :  { %816 = vmatpush.msra.mxu2 %v670_v60  ;;  %836 = vmatpush.msra.mxu3 %v686_v22  ;;  %v673_v60 = vld [vmem:[%s1811_s6 + $0x190] sm:$0xff] }
 0x14a   :  { %777 = vmatpush.msrb.mxu0 %v637_v23  ;;  %799 = vmatpush.msrb.mxu1 %v651_v12  ;;  %v624_v23 = vld [vmem:[%s1811_s6 + $0x8] sm:$0xff]  ;;  %v718_v12 = vld [vmem:[%s1811_s6 + $0x2f8] sm:$0xff] }
 0x14b   :  { %817 = vmatpush.msra.mxu2 %v669_v5  ;;  %837 = vmatpush.msra.mxu3 %v685_v6  ;;  %v656_v5 = vld [vmem:[%s1811_s6 + $0x108] sm:$0xff] }
 0x14c   :  { %778 = vmatpush.msrb.mxu0 %v636_v7  ;;  %800 = vmatpush.msrb.mxu1 %v650_v16  ;;  %v672_v6 = vld [vmem:[%s1811_s6 + $0x188] sm:$0xff]  ;;  %v623_v7 = vld [vmem:[%s1811_s6] sm:$0xff]  ;;  %v717_v16 = vld [vmem:[%s1811_s6 + $0x2f0] sm:$0xff] }
 0x14d   :  { %818 = vmatpush.msra.mxu2 %v668_v9  ;;  %838 = vmatpush.msra.mxu3 %v684_v10  ;;  %v655_v9 = vld [vmem:[%s1811_s6 + $0x100] sm:$0xff] }
 0x14e   :  { %779 = vmatpush.msrb.mxu0 %v635_v11  ;;  %801 = vmatpush.msrb.mxu1 %v649_v20  ;;  %v671_v10 = vld [vmem:[%s1811_s6 + $0x180] sm:$0xff]  ;;  %v702_v11 = vld [vmem:[%s1811_s6 + $0x278] sm:$0xff]  ;;  %v716_v20 = vld [vmem:[%s1811_s6 + $0x2e8] sm:$0xff] }
 0x14f   :  { %819 = vmatpush.msra.mxu2 %v667_v13  ;;  %839 = vmatpush.msra.mxu3 %v683_v14  ;;  %v734_v13 = vld [vmem:[%s1811_s6 + $0x378] sm:$0xff] }
 0x150   :  { %780 = vmatpush.msrb.mxu0 %v634_v15  ;;  %802 = vmatpush.msrb.mxu1 %v648_v26  ;;  %v750_v14 = vld [vmem:[%s1811_s6 + $0x3f8] sm:$0xff]  ;;  %v701_v15 = vld [vmem:[%s1811_s6 + $0x270] sm:$0xff]  ;;  %v715_v26 = vld [vmem:[%s1811_s6 + $0x2e0] sm:$0xff] }
 0x151   :  { %820 = vmatpush.msra.mxu2 %v666_v17  ;;  %840 = vmatpush.msra.mxu3 %v682_v18  ;;  %v733_v17 = vld [vmem:[%s1811_s6 + $0x370] sm:$0xff] }
 0x152   :  { %781 = vmatpush.msrb.mxu0 %v633_v19  ;;  %803 = vmatpush.msrb.mxu1 %v647_v30  ;;  %v749_v18 = vld [vmem:[%s1811_s6 + $0x3f0] sm:$0xff]  ;;  %v700_v19 = vld [vmem:[%s1811_s6 + $0x268] sm:$0xff] }
 0x153   :  { %821 = vmatpush.msra.mxu2 %v665_v21  ;;  %841 = vmatpush.msra.mxu3 %v681_v24  ;;  %v732_v21 = vld [vmem:[%s1811_s6 + $0x368] sm:$0xff] }
 0x154   :  { %782 = vmatpush.msrb.mxu0 %v632_v25  ;;  %804 = vmatpush.msrb.mxu1 %v646_v36  ;;  %v748_v24 = vld [vmem:[%s1811_s6 + $0x3e8] sm:$0xff]  ;;  %v699_v25 = vld [vmem:[%s1811_s6 + $0x260] sm:$0xff]  ;;  %v730_v36 = vld [vmem:[%s1811_s6 + $0x358] sm:$0xff] }
 0x155   :  { %822 = vmatpush.msra.mxu2 %v664_v27  ;;  %842 = vmatpush.msra.mxu3 %v680_v28  ;;  %v731_v27 = vld [vmem:[%s1811_s6 + $0x360] sm:$0xff] }
 0x156   :  { %783 = vmatpush.msrb.mxu0 %v631_v29  ;;  %805 = vmatpush.msrb.mxu1 %v645_v54  ;;  %v747_v29 = vld [vmem:[%s1811_s6 + $0x3e0] sm:$0xff]  ;;  %v744_v54 = vld [vmem:[%s1811_s6 + $0x3c8] sm:$0xff] }
 0x157   :  { %823 = vmatpush.msra.mxu2 %v663_v31  ;;  %843 = vmatpush.msra.mxu3 %v679_v34  ;;  %v698_v34 = vld [vmem:[%s1811_s6 + $0x258] sm:$0xff] }
 0x158   :  { %784 = vmatpush.msrb.mxu0 %v630_v35  ;;  %806 = vmatpush.msrb.mxu1 %v644_v59  ;;  %v714_v35 = vld [vmem:[%s1811_s6 + $0x2d8] sm:$0xff]  ;;  %v727_v59 = vld [vmem:[%s1811_s6 + $0x340] sm:$0xff] }
 0x159   :  { %824 = vmatpush.msra.mxu2 %v662_v41  ;;  %844 = vmatpush.msra.mxu3 %v678_v42 }
 0x15a   :  { %785 = vmatpush.msrb.mxu0 %v629_v52  ;;  %807 = vmatpush.msrb.mxu1 %v643_v63  ;;  %v728_v52 = vld [vmem:[%s1811_s6 + $0x348] sm:$0xff]  ;;  %v726_v63 = vld [vmem:[%s1811_s6 + $0x338] sm:$0xff] }
 0x15b   :  { %825 = vmatpush.msra.mxu2 %v661_v55  ;;  %845 = vmatpush.msra.mxu3 %v677_v33 }
 0x15c   :  { %786 = vmatpush.msrb.mxu0 %v628_v58  ;;  %808 = vmatpush.msrb.mxu1 %v642_v50  ;;  %v711_v58 = vld [vmem:[%s1811_s6 + $0x2c0] sm:$0xff]  ;;  %v709_v50 = vld [vmem:[%s1811_s6 + $0x2b0] sm:$0xff] }
 0x15d   :  { %826 = vmatpush.msra.mxu2 %v660_v61  ;;  %846 = vmatpush.msra.mxu3 %v676_v40  ;;  %v743_v61 = vld [vmem:[%s1811_s6 + $0x3c0] sm:$0xff] }
 0x15e   :  { %787 = vmatpush.msrb.mxu0 %v627_v47  ;;  %809 = vmatpush.msrb.mxu1 %v641_v39  ;;  %v710_v47 = vld [vmem:[%s1811_s6 + $0x2b8] sm:$0xff]  ;;  %v708_v39 = vld [vmem:[%s1811_s6 + $0x2a8] sm:$0xff] }
 0x15f   :  { %827 = vmatpush.msra.mxu2 %v659_v0  ;;  %847 = vmatpush.msra.mxu3 %v675_v56  ;;  %v742_v0 = vld [vmem:[%s1811_s6 + $0x3b8] sm:$0xff] }
 0x160   :  { %788 = vmatpush.msrb.mxu0 %v626_v38  ;;  %810 = vmatpush.msrb.mxu1 %v640_v4  ;;  %v693_v38 = vld [vmem:[%s1811_s6 + $0x230] sm:$0xff]  ;;  %v723_v4 = vld [vmem:[%s1811_s6 + $0x320] sm:$0xff] }
 0x161   :  { %828 = vmatpush.msra.mxu2 %v658_v1  ;;  %848 = vmatpush.msra.mxu3 %v674_v2  ;;  %v725_v1 = vld [vmem:[%s1811_s6 + $0x330] sm:$0xff] }
 0x162   :  { %789 = vmatpush.msrb.mxu0 %v625_v3  ;;  %811 = vmatpush.msrb.mxu1 %v639_v8  ;;  %v741_v2 = vld [vmem:[%s1811_s6 + $0x3b0] sm:$0xff]  ;;  %v692_v3 = vld [vmem:[%s1811_s6 + $0x228] sm:$0xff]  ;;  %v722_v8 = vld [vmem:[%s1811_s6 + $0x318] sm:$0xff] }
 0x163   :  { %829 = vmatpush.msra.mxu2 %v657_v53  ;;  %849 = vmatpush.msra.mxu3 %v673_v60  ;;  %v724_v53 = vld [vmem:[%s1811_s6 + $0x328] sm:$0xff] }
 0x164   :  { %790 = vmatpush.msrb.mxu0 %v624_v23  ;;  %876 = vmatpush.msra.mxu1 %v718_v12  ;;  %v740_v60 = vld [vmem:[%s1811_s6 + $0x3a8] sm:$0xff]  ;;  %v707_v23 = vld [vmem:[%s1811_s6 + $0x2a0] sm:$0xff]  ;;  %v705_v12 = vld [vmem:[%s1811_s6 + $0x290] sm:$0xff] }
 0x165   :  { %830 = vmatpush.msra.mxu2 %v656_v5  ;;  %850 = vmatpush.msra.mxu3 %v672_v6  ;;  %v739_v5 = vld [vmem:[%s1811_s6 + $0x3a0] sm:$0xff]  ;;  %v690_v6 = vld [vmem:[%s1811_s6 + $0x218] sm:$0xff] }
 0x166   :  { %791 = vmatpush.msrb.mxu0 %v623_v7  ;;  %877 = vmatpush.msra.mxu1 %v717_v16  ;;  %v706_v7 = vld [vmem:[%s1811_s6 + $0x298] sm:$0xff]  ;;  %v704_v16 = vld [vmem:[%s1811_s6 + $0x288] sm:$0xff] }
 0x167   :  { %831 = vmatpush.msra.mxu2 %v655_v9  ;;  %851 = vmatpush.msra.mxu3 %v671_v10  ;;  %v738_v10 = vld [vmem:[%s1811_s6 + $0x398] sm:$0xff] }
 0x168   :  { %856 = vmatpush.msra.mxu0 %v702_v11  ;;  %878 = vmatpush.msra.mxu1 %v716_v20  ;;  %v689_v11 = vld [vmem:[%s1811_s6 + $0x210] sm:$0xff]  ;;  %v703_v20 = vld [vmem:[%s1811_s6 + $0x280] sm:$0xff] }
 0x169   :  { %896 = vmatpush.msrb.mxu2 %v734_v13  ;;  %916 = vmatpush.msrb.mxu3 %v750_v14  ;;  %v721_v13 = vld [vmem:[%s1811_s6 + $0x310] sm:$0xff] }
 0x16a   :  { %857 = vmatpush.msra.mxu0 %v701_v15  ;;  %879 = vmatpush.msra.mxu1 %v715_v26  ;;  %v737_v14 = vld [vmem:[%s1811_s6 + $0x390] sm:$0xff]  ;;  %v688_v15 = vld [vmem:[%s1811_s6 + $0x208] sm:$0xff] }
 0x16b   :  { %897 = vmatpush.msrb.mxu2 %v733_v17  ;;  %917 = vmatpush.msrb.mxu3 %v749_v18  ;;  %v720_v17 = vld [vmem:[%s1811_s6 + $0x308] sm:$0xff] }
 0x16c   :  { %858 = vmatpush.msra.mxu0 %v700_v19  ;;  %880 = vmatpush.msra.mxu1 %v714_v35  ;;  %v736_v18 = vld [vmem:[%s1811_s6 + $0x388] sm:$0xff]  ;;  %v687_v19 = vld [vmem:[%s1811_s6 + $0x200] sm:$0xff] }
 0x16d   :  { %898 = vmatpush.msrb.mxu2 %v732_v21  ;;  %918 = vmatpush.msrb.mxu3 %v748_v24  ;;  %v719_v21 = vld [vmem:[%s1811_s6 + $0x300] sm:$0xff] }
 0x16e   :  { %859 = vmatpush.msra.mxu0 %v699_v25  ;;  %v735_v24 = vld [vmem:[%s1811_s6 + $0x380] sm:$0xff] }
 0x16f   :  { %899 = vmatpush.msrb.mxu2 %v731_v27  ;;  %919 = vmatpush.msrb.mxu3 %v747_v29 }
 0x170   :  { %860 = vmatpush.msra.mxu0 %v698_v34 }
 0x171   :  { %900 = vmatpush.msrb.mxu2 %v730_v36 }
 0x1b3   :  { %v494_v45 = vpop.f32.mrf.mxu0  ;;  %v514_v46 = vpop.f32.mrf.mxu1 }
 0x1b4   :  { %v495_v37 = vadd.f32 %v494_v45, %v1444_v44  ;;  %v515_v43 = vadd.f32 %v514_v46, %v1444_v44  ;;  %v746_v45 = vld [vmem:[%s1811_s6 + $0x3d8] sm:$0xff]  ;;  %v697_v46 = vld [vmem:[%s1811_s6 + $0x250] sm:$0xff] }
 0x1b5   :  { %920 = vmatpush.msrb.mxu3 %v746_v45  ;;  %861 = vmatpush.msra.mxu0 %v697_v46  ;;  %v943_v45 = vld [vmem:[%s1813_s8 + $0x30] sm:$0xff]  ;;  %v942_v46 = vld [vmem:[%s1813_s8 + $0x28] sm:$0xff] }
 0x1b6   :  { %v1448_v49 = vmax.f32 %v495_v37, 0.0  ;;  %v1450_v51 = vmax.f32 %v515_v43, 0.0  ;;  %v713_v37 = vld [vmem:[%s1811_s6 + $0x2d0] sm:$0xff] }
 0x1b7   :  { %v745_v43 = vld [vmem:[%s1811_s6 + $0x3d0] sm:$0xff]  ;;  %881 = vmatpush.msra.mxu1 %v713_v37  ;;  %v941_v37 = vld [vmem:[%s1813_s8 + $0x20] sm:$0xff] }
 0x1b8   :  { %572 = vst [vmem:[#allocation1] sm:$0xff] %v1448_v49  ;;  %v563_v32 = vrot.slane %v1450_v51, 7  ;;  %921 = vmatpush.msrb.mxu3 %v745_v43  ;;  %v939_v43 = vld [vmem:[%s1813_s8 + $0x10] sm:$0xff] }
 0x1b9   :  { %573 = vst [vmem:[#allocation1 + $0x9] sm:$0xff] %v1450_v51 }
 0x1ba   :  { %v565_v62 = vsel %vm564_vm10, %v1448_v49, %v563_v32  ;;  %v695_v32 = vld [vmem:[%s1811_s6 + $0x240] sm:$0xff]  ;;  %922 = vmatpush.msrb.mxu3 %v744_v54 }
 0x1bb   :  { %571 = vst.msk [vmem:[#allocation4] ss:$2 sm:$0x3] %vm1466_vm11, %v565_v62  ;;  %v694_v62 = vld [vmem:[%s1811_s6 + $0x238] sm:$0xff] }
 0x1bc   :  { %923 = vmatpush.msrb.mxu3 %v743_v61 }
 0x1be   :  { %924 = vmatpush.msrb.mxu3 %v742_v0 }
 0x1c0   :  { %v575_v22 = vld [vmem:[#allocation1 + $0x1] ss:$9 sm:$0xff]  ;;  %925 = vmatpush.msrb.mxu3 %v741_v2 }
 0x1c1   :  { %578 = vst.msk [vmem:[#allocation4 + $0x4] ss:$2 sm:$0x3] %vm1466_vm11, %v575_v22  ;;  %v691_v22 = vld [vmem:[%s1811_s6 + $0x220] sm:$0xff] }
 0x1c2   :  { %579 = vst [vmem:[#allocation1] sm:$0xff] %v1448_v49  ;;  %926 = vmatpush.msrb.mxu3 %v740_v60  ;;  %v1094_v2 = vld [vmem:[%s1814_s9] ss:$0 sm:$0xff] }
 0x1c3   :  { %580 = vst [vmem:[#allocation1 + $0x9] sm:$0xff] %v1450_v51 }
 0x1c4   :  { %927 = vmatpush.msrb.mxu3 %v739_v5 }
 0x1c6   :  { %928 = vmatpush.msrb.mxu3 %v738_v10 }
 0x1c8   :  { %929 = vmatpush.msrb.mxu3 %v737_v14 }
 0x1ca   :  { %v582_v28 = vld [vmem:[#allocation1 + $0x2] ss:$9 sm:$0xff]  ;;  %930 = vmatpush.msrb.mxu3 %v736_v18 }
 0x1cb   :  { %585 = vst.msk [vmem:[#allocation4 + $0x8] ss:$2 sm:$0x3] %vm1466_vm11, %v582_v28  ;;  %v534_v30 = vpop.f32.mrf.mxu2  ;;  %v554_v31 = vpop.f32.mrf.mxu3 }
 0x1cc   :  { %587 = vst [vmem:[#allocation1 + $0x9] sm:$0xff] %v1450_v51  ;;  %v535_v41 = vadd.f32 %v534_v30, %v1444_v44  ;;  %v555_v42 = vadd.f32 %v554_v31, %v1444_v44  ;;  %v729_v44 = vld [vmem:[%s1811_s6 + $0x350] sm:$0xff]  ;;  %v696_v51 = vld [vmem:[%s1811_s6 + $0x248] sm:$0xff]  ;;  %931 = vmatpush.msrb.mxu3 %v735_v24 }
 0x1cd   :  { %586 = vst [vmem:[#allocation1] sm:$0xff] %v1448_v49  ;;  %v712_v49 = vld [vmem:[%s1811_s6 + $0x2c8] sm:$0xff]  ;;  %901 = vmatpush.msrb.mxu2 %v729_v44  ;;  %862 = vmatpush.msra.mxu0 %v696_v51  ;;  %v940_v44 = vld [vmem:[%s1813_s8 + $0x18] sm:$0xff]  ;;  %v937_v51 = vld [vmem:[%s1813_s8] sm:$0xff] }
 0x1ce   :  { %v1629_v48 = vmax.f32 %v555_v42, 0.0  ;;  %v1643_v55 = vmax.f32 %v535_v41, 0.0  ;;  %882 = vmatpush.msra.mxu1 %v712_v49  ;;  %v1093_v49 = vld [vmem:[%s1812_s7] ss:$0 sm:$0xff] }
 0x1cf   :  { %902 = vmatpush.msrb.mxu2 %v728_v52  ;;  %863 = vmatpush.msra.mxu0 %v695_v32 }
 0x1d0   :  { %v595_v33 = vrot.slane %v1629_v48, 7  ;;  %883 = vmatpush.msra.mxu1 %v711_v58 }
 0x1d1   :  { %903 = vmatpush.msrb.mxu2 %v727_v59  ;;  %864 = vmatpush.msra.mxu0 %v694_v62 }
 0x1d2   :  { %v596_v40 = vsel %vm564_vm10, %v1643_v55, %v595_v33  ;;  %884 = vmatpush.msra.mxu1 %v710_v47 }
 0x1d3   :  { %599 = vst.msk [vmem:[#allocation4 + $0x1] ss:$2 sm:$0x3] %vm1466_vm11, %v596_v40  ;;  %904 = vmatpush.msrb.mxu2 %v726_v63  ;;  %865 = vmatpush.msra.mxu0 %v693_v38 }
 0x1d4   :  { %v589_v56 = vld [vmem:[#allocation1 + $0x3] ss:$9 sm:$0xff]  ;;  %885 = vmatpush.msra.mxu1 %v709_v50 }
 0x1d5   :  { %592 = vst.msk [vmem:[#allocation4 + $0xc] ss:$2 sm:$0x3] %vm1466_vm11, %v589_v56  ;;  %905 = vmatpush.msrb.mxu2 %v725_v1  ;;  %866 = vmatpush.msra.mxu0 %v692_v3 }
 0x1d6   :  { %600 = vst [vmem:[#allocation1] sm:$0xff] %v1643_v55  ;;  %886 = vmatpush.msra.mxu1 %v708_v39 }
 0x1d7   :  { %601 = vst [vmem:[#allocation1 + $0x9] sm:$0xff] %v1629_v48  ;;  %906 = vmatpush.msrb.mxu2 %v724_v53  ;;  %867 = vmatpush.msra.mxu0 %v691_v22 }
 0x1d8   :  { %887 = vmatpush.msra.mxu1 %v707_v23 }
 0x1d9   :  { %907 = vmatpush.msrb.mxu2 %v723_v4  ;;  %868 = vmatpush.msra.mxu0 %v690_v6 }
 0x1da   :  { %888 = vmatpush.msra.mxu1 %v706_v7 }
 0x1db   :  { %908 = vmatpush.msrb.mxu2 %v722_v8  ;;  %869 = vmatpush.msra.mxu0 %v689_v11 }
 0x1dc   :  { %889 = vmatpush.msra.mxu1 %v705_v12 }
 0x1dd   :  { %909 = vmatpush.msrb.mxu2 %v721_v13  ;;  %870 = vmatpush.msra.mxu0 %v688_v15 }
 0x1de   :  { %v603_v9 = vld [vmem:[#allocation1 + $0x1] ss:$9 sm:$0xff]  ;;  %890 = vmatpush.msra.mxu1 %v704_v16 }
 0x1df   :  { %606 = vst.msk [vmem:[#allocation4 + $0x5] ss:$2 sm:$0x3] %vm1466_vm11, %v603_v9  ;;  %910 = vmatpush.msrb.mxu2 %v720_v17  ;;  %871 = vmatpush.msra.mxu0 %v687_v19 }
 0x1e0   :  { %607 = vst [vmem:[#allocation1] sm:$0xff] %v1643_v55  ;;  %891 = vmatpush.msra.mxu1 %v703_v20 }
 0x1e1   :  { %608 = vst [vmem:[#allocation1 + $0x9] sm:$0xff] %v1629_v48  ;;  %911 = vmatpush.msrb.mxu2 %v719_v21 }
 0x1e6   :  { %v621_v27 = vld [vmem:[#allocation4] sm:$0xff] }
 0x1e8   :  { %v610_v25 = vld [vmem:[#allocation1 + $0x2] ss:$9 sm:$0xff] }
 0x1e9   :  { %613 = vst.msk [vmem:[#allocation4 + $0x9] ss:$2 sm:$0x3] %vm1466_vm11, %v610_v25 }
 0x1ea   :  { %615 = vst [vmem:[#allocation1 + $0x9] sm:$0xff] %v1629_v48  ;;  %v938_v48 = vld [vmem:[%s1813_s8 + $0x8] sm:$0xff] }
 0x1eb   :  { %614 = vst [vmem:[#allocation1] sm:$0xff] %v1643_v55 }
 0x1f2   :  { %v617_v26 = vld [vmem:[#allocation1 + $0x3] ss:$9 sm:$0xff] }
 0x1f3   :  { %620 = vst.msk [vmem:[#allocation4 + $0xd] ss:$2 sm:$0x3] %vm1466_vm11, %v617_v26 }
 0x1f4   :  { %757 = vst [vmem:[#allocation1] ss:$4 sm:$0xff] %v621_v27 }
 0x1fa   :  { %v622_v28 = vld [vmem:[#allocation4 + $0x8] sm:$0xff] }
 0x1fb   :  { %v760_v29 = vld.sshfl [vmem:[#allocation1] sm:$0xff pattern:$0x73625140]  ;;  %v761_v30 = vld.sshfl [vmem:[#allocation1 + $0x8] sm:$0xff pattern:$0x73625140] }
 0x1fc   :  { %792 = vmatmul.f32.vlgmr.msrb.gmra.mxu0 %v760_v29  ;;  %812 = vmatmul.f32.vlgmr.msrb.gmra.mxu1 %v761_v30  ;;  %v762_v31 = vld.sshfl [vmem:[#allocation1 + $0x10] sm:$0xff pattern:$0x73625140]  ;;  %v763_v34 = vld.sshfl [vmem:[#allocation1 + $0x18] sm:$0xff pattern:$0x73625140] }
 0x1fd   :  { %832 = vmatmul.f32.vlgmr.msra.gmra.mxu2 %v762_v31  ;;  %852 = vmatmul.f32.vlgmr.msra.gmra.mxu3 %v763_v34  ;;  %759 = vst [vmem:[#allocation1 + $0x20] ss:$4 sm:$0xff] %v622_v28 }
 0x1fe   :  { %961 = vmatpush.msrb.mxu0 %v944_v57 }
 0x200   :  { %962 = vmatpush.msrb.mxu0 %v943_v45 }
 0x202   :  { %963 = vmatpush.msrb.mxu0 %v942_v46 }
 0x204   :  { %v764_v35 = vld.sshfl [vmem:[#allocation1 + $0x20] sm:$0xff pattern:$0x73625140]  ;;  %v765_v36 = vld.sshfl [vmem:[#allocation1 + $0x28] sm:$0xff pattern:$0x73625140]  ;;  %964 = vmatpush.msrb.mxu0 %v941_v37 }
 0x205   :  { %872 = vmatmul.f32.vlgmr.msra.gmra.mxu0 %v764_v35  ;;  %892 = vmatmul.f32.vlgmr.msra.gmra.mxu1 %v765_v36  ;;  %v766_v41 = vld.sshfl [vmem:[#allocation1 + $0x30] sm:$0xff pattern:$0x73625140]  ;;  %v767_v42 = vld.sshfl [vmem:[#allocation1 + $0x38] sm:$0xff pattern:$0x73625140] }
 0x206   :  { %912 = vmatmul.f32.vlgmr.msrb.gmra.mxu2 %v766_v41  ;;  %932 = vmatmul.f32.vlgmr.msrb.gmra.mxu3 %v767_v42 }
 0x207   :  { %965 = vmatpush.msrb.mxu0 %v940_v44 }
 0x209   :  { %966 = vmatpush.msrb.mxu0 %v939_v43 }
 0x20b   :  { %967 = vmatpush.msrb.mxu0 %v938_v48 }
 0x20d   :  { %968 = vmatpush.msrb.mxu0 %v937_v51 }
 0x279   :  { %v793_v52 = vpop.f32.mrf.mxu0  ;;  %v813_v55 = vpop.f32.mrf.mxu1 }
 0x27a   :  { %v794_v54 = vadd.f32 %v1093_v49, %v793_v52 }
 0x27c   :  { %v814_v33 = vadd.f32 %v813_v55, %v794_v54 }
 0x280   :  { %v833_v32 = vpop.f32.mrf.mxu2  ;;  %v853_v59 = vpop.f32.mrf.mxu3 }
 0x281   :  { %v834_v58 = vadd.f32 %v833_v32, %v814_v33 }
 0x282   :  { %v873_v40 = vpop.f32.mrf.mxu0  ;;  %v893_v47 = vpop.f32.mrf.mxu1 }
 0x283   :  { %v854_v61 = vadd.f32 %v853_v59, %v834_v58 }
 0x285   :  { %v874_v62 = vadd.f32 %v873_v40, %v854_v61 }
 0x287   :  { %v894_v63 = vadd.f32 %v893_v47, %v874_v62 }
 0x289   :  { %v913_v0 = vpop.f32.mrf.mxu2  ;;  %v933_v38 = vpop.f32.mrf.mxu3 }
 0x28a   :  { %v914_v56 = vadd.f32 %v913_v0, %v894_v63 }
 0x28c   :  { %v934_v50 = vadd.f32 %v933_v38, %v914_v56 }
 0x28e   :  { %v936_v1 = vmax.f32 %v934_v50, 0.0 }
 0x290   :  { %999 = vmatmul.msk.f32.vlgmr.msrb.gmra.mxu0 %vm949_vm12, %v936_v1 }
 0x30d   :  { %v970_v3 = vpop.f32.mrf.mxu0 }
 0x30e   :  { %v971_v39 = vadd.f32 %v1094_v2, %v970_v3 }
 0x310   :  { %974 = vst.msk [vmem:[#allocation5] sm:$0x3] %vm973_vm13, %v971_v39 }
 0x311   :  { %985 = dma.vmem_to_hbm [thread:$0]  %s981_s0, 32, %s983_s14, [#allocation6]  }
 0x312   :  { %1119 = dma.done.wait [#allocation6], 32  }
 0x313   :  { %1120 = vsyncadd [#allocation6], 4294967264 }
 0x314   :  { %990 = vsyncpa [#allocation6], 1 }

</bundles_post_ra>
